<compile_context>
chip_gen: v5e
topology: v5e:2x2
jax: 0.10.0
libtpu: 0.0.40
codegen_flags: <defaults>
</compile_context>

<pallas_src>
import functools

import numpy as np
import jax
import jax.numpy as jnp
from jax.experimental import pallas as pl
from jax.experimental.pallas import tpu as pltpu

LANE = 128
SUBLANE = 8


def _round_up(v, m):
    return ((v + m - 1) // m) * m


def _gcn_dense_kernel(*refs, num_layers, improved, add_loop, group):
    # refs: adj, x, mask, [bd_mask if group>1], w0, b0, w1, b1, ..., out
    adj_ref, x_ref, mask_ref = refs[0], refs[1], refs[2]
    nxt = 3
    bd_ref = None
    if group > 1:
        bd_ref = refs[nxt]
        nxt += 1
    layer_refs = refs[nxt:-1]
    out_ref = refs[-1]

    bblk, n, _ = adj_ref.shape
    pack = group * n
    n_groups = bblk // group
    rows = bblk * n

    # --- self-loops + degree normalization, computed ONCE and shared by all layers ---
    adj = adj_ref[...].astype(jnp.float32)                       # (bblk, n, n)
    if add_loop:
        loop_val = 2.0 if improved else 1.0
        r = jax.lax.broadcasted_iota(jnp.int32, (n, n), 0)
        c = jax.lax.broadcasted_iota(jnp.int32, (n, n), 1)
        adj = jnp.where((r == c)[None, :, :], jnp.float32(loop_val), adj)

    deg = jnp.sum(adj, axis=-1, keepdims=True)                   # (bblk, n, 1)
    dinv = jax.lax.rsqrt(jnp.maximum(deg, 1.0))                  # EUP rsqrt (free slot)
    adj = adj * dinv                                             # row scale:  D^-1/2 A
    adj = adj * dinv.reshape(bblk, 1, n)                         # col scale:  ... D^-1/2

    # --- pack `group` graphs into one block-diagonal adjacency per MXU matmul ---
    if group > 1:
        a = adj.reshape(n_groups, pack, n)                       # stack group graphs' rows
        a = jnp.concatenate([a] * group, axis=-1)                # (n_groups, pack, pack)
        a = a * bd_ref[...]                                      # zero off-diagonal blocks
    else:
        a = adj                                                  # (n_groups=bblk, pack=n, n)

    maskf = mask_ref[...].reshape(rows, 1)                       # (rows, 1)
    h = x_ref[...].reshape(rows, x_ref.shape[-1])                # (rows, Din_pad)

    for i in range(num_layers):
        w = layer_refs[2 * i][...]                               # (din_pad, dout_pad), resident
        b = layer_refs[2 * i + 1][...]                           # (1, dout_pad), resident
        dout = w.shape[1]
        # Linear: one big MXU matmul over all bblk*n rows.
        h = jnp.dot(h, w, preferred_element_type=jnp.float32)    # (rows, dout)
        # Aggregation: packed block-diagonal matmul per group of graphs.
        hp = h.reshape(n_groups, pack, dout)
        hp = jnp.einsum("gpq,gqd->gpd", a, hp,
                        preferred_element_type=jnp.float32)
        h = hp.reshape(rows, dout)
        h = h + b
        h = h * maskf

    out_ref[...] = h.reshape(bblk, n, out_ref.shape[-1])


def _vmem_budget_and_limit():
    """Generation-aware VMEM budget (bytes) for one block, plus scoped limit to request."""
    cap = 64 * 1024 * 1024                        # conservative fallback (v7x-sized)
    try:
        info = pltpu.get_tpu_info()
        cap = int(getattr(info, "vmem_capacity_bytes", cap))
    except Exception:
        pass
    limit = min(cap * 3 // 4, 100 * 1024 * 1024)  # ~96 MiB on v5e/v6e, ~48 MiB on v7x
    return limit // 2, limit


def _pick_group(B, n_pad, pack_target=128):
    """Largest divisor of B with group*n_pad <= pack_target (MXU-sized packed matmul)."""
    g = min(max(1, pack_target // n_pad), B)
    while g > 1 and B % g:
        g -= 1
    return g


def _pick_block_b(B, group, n_pad, dims_pad, budget_bytes):
    """Largest multiple of `group` dividing B that fits the budget, preferring >=4 (else >=2)
    grid steps so the pipeline overlaps DMA and v7x's two TensorCores both get work."""
    num_layers = len(dims_pad) - 1
    dmax = max(dims_pad)
    wgt = sum(dims_pad[i] * dims_pad[i + 1] + dims_pad[i + 1]
              for i in range(num_layers)) * 4 * 2

    def bytes_for(bb):
        ng = bb // group
        io = 2 * bb * n_pad * (n_pad + dims_pad[0] + 1 + dims_pad[-1]) * 4  # dbl-buffered adj/x/mask/out
        live = (bb * n_pad * n_pad                 # normalized adj copy
                + ng * (group * n_pad) ** 2        # packed block-diag adjacency
                + 3 * bb * n_pad * dmax            # live h / matmul temporaries
                + bb * n_pad) * 4                  # degree scale
        return io + live + wgt

    cands = [bb for bb in range(group, B + 1, group)
             if B % bb == 0 and bytes_for(bb) <= budget_bytes]
    if not cands:
        return group                               # smallest packable block; extreme shapes may spill
    for min_steps in (4, 2):
        ok = [bb for bb in cands if B // bb >= min_steps]
        if ok:
            return max(ok)
    return max(cands)


def gcn_dense(x, adj, mask, weights, biases, *, improved=False, add_loop=True,
              block_b=None, adj_dtype=None, pack_target=128):
    """Pallas implementation of GCN_Dense.forward.

    x:       (B, N, Din)  float32
    adj:     (B, N, N)    float32
    mask:    (B, N)       float/bool node mask
    weights: list of (Din_i, Dout_i) float32 (already transposed vs nn.Linear.weight)
    biases:  list of (Dout_i,)       float32
    adj_dtype: optional streaming dtype for adj (e.g. jnp.bfloat16) — math stays f32.
    returns: (B, N, Dout_last) float32
    """
    B, N, Din = x.shape
    assert adj.shape == (B, N, N)
    num_layers = len(weights)
    assert num_layers >= 1 and len(biases) == num_layers

    dims = [Din] + [int(w.shape[1]) for w in weights]
    for i, w in enumerate(weights):
        assert int(w.shape[0]) == dims[i], "inconsistent layer widths"
    Dout = dims[-1]

    f32 = jnp.float32
    # Layout padding: nodes -> multiple of 8 sublanes; hidden/output dims -> full 128 lanes
    # (zero padding is exact: padded weight rows/cols, biases and nodes contribute zeros).
    n_pad = _round_up(N, SUBLANE)
    dims_pad = [_round_up(Din, SUBLANE)] + [_round_up(d, LANE) for d in dims[1:]]

    adj_stream_dtype = f32 if adj_dtype is None else adj_dtype
    adj_p = jnp.pad(adj.astype(f32),
                    ((0, 0), (0, n_pad - N), (0, n_pad - N))).astype(adj_stream_dtype)
    x_p = jnp.pad(x.astype(f32), ((0, 0), (0, n_pad - N), (0, dims_pad[0] - Din)))
    mask_p = jnp.pad(jnp.reshape(mask, (B, N)).astype(f32),
                     ((0, 0), (0, n_pad - N))).reshape(B, n_pad, 1)

    weights_p, biases_p = [], []
    for i, (w, b) in enumerate(zip(weights, biases)):
        w = jnp.asarray(w, f32)
        b = jnp.asarray(b, f32).reshape(1, -1)
        weights_p.append(jnp.pad(w, ((0, dims_pad[i] - dims[i]),
                                     (0, dims_pad[i + 1] - dims[i + 1]))))
        biases_p.append(jnp.pad(b, ((0, 0), (0, dims_pad[i + 1] - dims[i + 1]))))

    # Blocking: pack `group` graphs per aggregation matmul; size blocks for VMEM & pipelining.
    group = _pick_group(B, n_pad, pack_target)
    budget, vmem_limit = _vmem_budget_and_limit()
    if block_b is None:
        block_b = _pick_block_b(B, group, n_pad, dims_pad, budget)
    assert B % block_b == 0 and block_b % group == 0
    grid = (B // block_b,)
    pack = group * n_pad

    inputs = [adj_p, x_p, mask_p]
    in_specs = [
        pl.BlockSpec((block_b, n_pad, n_pad), lambda i: (i, 0, 0)),          # adj
        pl.BlockSpec((block_b, n_pad, dims_pad[0]), lambda i: (i, 0, 0)),    # x
        pl.BlockSpec((block_b, n_pad, 1), lambda i: (i, 0, 0)),              # mask
    ]
    if group > 1:
        bid = np.repeat(np.arange(group), n_pad)
        bd_mask = jnp.asarray((bid[:, None] == bid[None, :]).astype(np.float32))
        inputs.append(bd_mask)
        in_specs.append(pl.BlockSpec((pack, pack), lambda i: (0, 0)))        # resident block mask
    for w, b in zip(weights_p, biases_p):
        inputs += [w, b]
        in_specs += [pl.BlockSpec(w.shape, lambda i: (0, 0)),                # resident weight
                     pl.BlockSpec(b.shape, lambda i: (0, 0))]                # resident bias

    kernel = functools.partial(_gcn_dense_kernel, num_layers=num_layers,
                               improved=improved, add_loop=add_loop, group=group)

    out_p = pl.pallas_call(
        kernel,
        out_shape=jax.ShapeDtypeStruct((B, n_pad, dims_pad[-1]), f32),
        grid_spec=pltpu.PrefetchScalarGridSpec(
            num_scalar_prefetch=0,
            grid=grid,
            in_specs=in_specs,
            out_specs=pl.BlockSpec((block_b, n_pad, dims_pad[-1]), lambda i: (i, 0, 0)),
        ),
        compiler_params=pltpu.CompilerParams(
            dimension_semantics=("parallel",),
            vmem_limit_bytes=vmem_limit,
        ),
    )(*inputs)

    return out_p[:, :N, :Dout]


def reference(x, adj, mask, weights, biases, *, improved=False, add_loop=True):
    """Pure-JAX reference matching the PyTorch module."""
    B, N, _ = adj.shape
    a = adj
    if add_loop:
        eye = jnp.eye(N, dtype=adj.dtype)
        val = 2.0 if improved else 1.0
        a = a * (1.0 - eye) + val * eye
    deg = jnp.maximum(jnp.sum(a, axis=-1), 1.0)
    dis = 1.0 / jnp.sqrt(deg)
    a_norm = dis[:, :, None] * a * dis[:, None, :]
    m = mask.reshape(B, N, 1).astype(x.dtype)
    h = x
    for w, b in zip(weights, biases):
        h = jnp.einsum("bnd,de->bne", h, w)
        h = jnp.einsum("bnm,bme->bne", a_norm, h)
        h = h + b
        h = h * m
    return h


if __name__ == "__main__":
    # Small shapes consistent with GCN_Dense(input_dim=32, output_dim=32,
    # hidden_dim=32, num_layers=2) applied to a batch of 2 dense graphs of 16 nodes.
    B, N = 2, 16
    input_dim, hidden_dim, output_dim, num_layers = 32, 32, 32, 2

    key = jax.random.PRNGKey(0)
    kx, kadj, kw1, kw2, kb1, kb2 = jax.random.split(key, 6)

    x = jax.random.normal(kx, (B, N, input_dim), dtype=jnp.float32)
    adj = (jax.random.uniform(kadj, (B, N, N)) > 0.5).astype(jnp.float32)
    adj = jnp.maximum(adj, jnp.swapaxes(adj, -1, -2))        # symmetric 0/1 adjacency
    lengths = jnp.array([16, 12])                            # valid-node counts per graph
    mask = (jnp.arange(N)[None, :] < lengths[:, None]).astype(jnp.float32)

    def linear_init(k, fan_in, fan_out):
        bound = 1.0 / (fan_in ** 0.5)                        # nn.Linear default range
        return jax.random.uniform(k, (fan_in, fan_out), jnp.float32, -bound, bound)

    weights = [linear_init(kw1, input_dim, hidden_dim),
               linear_init(kw2, hidden_dim, output_dim)]
    # Spec initializes biases to zero; small random values here exercise the bias add.
    biases = [0.1 * jax.random.normal(kb1, (hidden_dim,), dtype=jnp.float32),
              0.1 * jax.random.normal(kb2, (output_dim,), dtype=jnp.float32)]

    out = gcn_dense(x, adj, mask, weights, biases)
    out = jax.block_until_ready(out)

    ref = reference(x, adj, mask, weights, biases)
    assert out.shape == (B, N, output_dim)
    assert jnp.allclose(out, ref, atol=1e-4, rtol=1e-4), "mismatch vs JAX reference"

    print("KERNEL_OK")
</pallas_src>

<mosaic_0001>
module attributes {stable_mosaic.version = 11 : i64} {
  func.func @_gcn_dense_kernel(%arg0: i32, %arg1: memref<2x16x16xf32, #tpu.memory_space<vmem>>, %arg2: memref<2x16x32xf32, #tpu.memory_space<vmem>>, %arg3: memref<2x16x1xf32, #tpu.memory_space<vmem>>, %arg4: memref<32x32xf32, #tpu.memory_space<vmem>>, %arg5: memref<32x128xf32, #tpu.memory_space<vmem>>, %arg6: memref<1x128xf32, #tpu.memory_space<vmem>>, %arg7: memref<128x128xf32, #tpu.memory_space<vmem>>, %arg8: memref<1x128xf32, #tpu.memory_space<vmem>>, %arg9: memref<2x16x128xf32, #tpu.memory_space<vmem>>) attributes {dimension_semantics = [#tpu.dimension_semantics<parallel>], iteration_bounds = array<i64: 1>, scalar_prefetch = 0 : i64, scratch_operands = 0 : i64, tpu.core_type = #tpu.core_type<tc>, window_params = [{transform_indices = @transform_0, window_bounds = array<i64: 2, 16, 16>}, {transform_indices = @transform_1, window_bounds = array<i64: 2, 16, 32>}, {transform_indices = @transform_2, window_bounds = array<i64: 2, 16, 1>}, {pipeline_mode = #tpu.pipeline_mode<synchronous>, transform_indices = @transform_3, window_bounds = array<i64: 32, 32>}, {pipeline_mode = #tpu.pipeline_mode<synchronous>, transform_indices = @transform_4, window_bounds = array<i64: 32, 128>}, {pipeline_mode = #tpu.pipeline_mode<synchronous>, transform_indices = @transform_5, window_bounds = array<i64: 1, 128>}, {pipeline_mode = #tpu.pipeline_mode<synchronous>, transform_indices = @transform_6, window_bounds = array<i64: 128, 128>}, {pipeline_mode = #tpu.pipeline_mode<synchronous>, transform_indices = @transform_7, window_bounds = array<i64: 1, 128>}, {transform_indices = @transform_8, window_bounds = array<i64: 2, 16, 128>}]} {
    %c0 = arith.constant 0 : index
    %c0_0 = arith.constant 0 : index
    %c0_1 = arith.constant 0 : index
    %0 = vector.load %arg1[%c0, %c0_0, %c0_1] : memref<2x16x16xf32, #tpu.memory_space<vmem>>, vector<2x16x16xf32>
    %1 = tpu.iota {dimensions = array<i32: 0>} : vector<16x16xi32>
    %2 = tpu.iota {dimensions = array<i32: 1>} : vector<16x16xi32>
    %3 = arith.cmpi eq, %1, %2 : vector<16x16xi32>
    %4 = vector.shape_cast %3 : vector<16x16xi1> to vector<1x16x16xi1>
    %cst = arith.constant 1.000000e+00 : f32
    %5 = vector.shape_cast %4 : vector<1x16x16xi1> to vector<1x16x16xi1>
    %6 = vector.broadcast %5 : vector<1x16x16xi1> to vector<2x16x16xi1>
    %7 = vector.broadcast %cst : f32 to vector<2x16x16xf32>
    %8 = arith.select %6, %7, %0 : vector<2x16x16xi1>, vector<2x16x16xf32>
    %cst_2 = arith.constant dense<0.000000e+00> : vector<2x16xf32>
    %9 = vector.multi_reduction <add>, %8, %cst_2 [2] : vector<2x16x16xf32> to vector<2x16xf32>
    %10 = vector.shape_cast %9 : vector<2x16xf32> to vector<2x16x1xf32>
    %cst_3 = arith.constant 1.000000e+00 : f32
    %11 = vector.broadcast %cst_3 : f32 to vector<2x16x1xf32>
    %12 = arith.maximumf %10, %11 : vector<2x16x1xf32>
    %13 = math.rsqrt %12 : vector<2x16x1xf32>
    %14 = vector.broadcast %13 : vector<2x16x1xf32> to vector<2x16x16xf32>
    %15 = arith.mulf %8, %14 : vector<2x16x16xf32>
    %16 = vector.shape_cast %13 : vector<2x16x1xf32> to vector<2x1x16xf32>
    %17 = vector.broadcast %16 : vector<2x1x16xf32> to vector<2x16x16xf32>
    %18 = arith.mulf %15, %17 : vector<2x16x16xf32>
    %19 = vector.shape_cast %18 : vector<2x16x16xf32> to vector<1x32x16xf32>
    %20 = tpu.concatenate %19, %19 in 2 : vector<1x32x16xf32>, vector<1x32x16xf32> -> vector<1x32x32xf32>
    %c0_4 = arith.constant 0 : index
    %c0_5 = arith.constant 0 : index
    %21 = vector.load %arg4[%c0_4, %c0_5] : memref<32x32xf32, #tpu.memory_space<vmem>>, vector<32x32xf32>
    %22 = vector.shape_cast %21 : vector<32x32xf32> to vector<1x32x32xf32>
    %23 = arith.mulf %20, %22 : vector<1x32x32xf32>
    %c0_6 = arith.constant 0 : index
    %c0_7 = arith.constant 0 : index
    %c0_8 = arith.constant 0 : index
    %24 = vector.load %arg3[%c0_6, %c0_7, %c0_8] : memref<2x16x1xf32, #tpu.memory_space<vmem>>, vector<2x16x1xf32>
    %25 = vector.shape_cast %24 : vector<2x16x1xf32> to vector<32x1xf32>
    %c0_9 = arith.constant 0 : index
    %c0_10 = arith.constant 0 : index
    %c0_11 = arith.constant 0 : index
    %26 = vector.load %arg2[%c0_9, %c0_10, %c0_11] : memref<2x16x32xf32, #tpu.memory_space<vmem>>, vector<2x16x32xf32>
    %27 = vector.shape_cast %26 : vector<2x16x32xf32> to vector<32x32xf32>
    %c0_12 = arith.constant 0 : index
    %c0_13 = arith.constant 0 : index
    %28 = vector.load %arg5[%c0_12, %c0_13] : memref<32x128xf32, #tpu.memory_space<vmem>>, vector<32x128xf32>
    %c0_14 = arith.constant 0 : index
    %c0_15 = arith.constant 0 : index
    %29 = vector.load %arg6[%c0_14, %c0_15] : memref<1x128xf32, #tpu.memory_space<vmem>>, vector<1x128xf32>
    %cst_16 = arith.constant dense<0.000000e+00> : vector<32x128xf32>
    %30 = tpu.matmul %27, %28, %cst_16 {dimension_numbers = #tpu.dot_dimension_numbers<[1], [0], [0], [1], [0, 0, 1, 1], [], []>} : vector<32x32xf32>, vector<32x128xf32>, vector<32x128xf32> -> vector<32x128xf32>
    %31 = vector.shape_cast %30 : vector<32x128xf32> to vector<1x32x128xf32>
    "tpu.trace_start"() <{level = 10 : i32, message = "gpq,gqd->gpd"}> : () -> ()
    %cst_17 = arith.constant dense<0.000000e+00> : vector<1x32x128xf32>
    %32 = tpu.matmul %23, %31, %cst_17 {dimension_numbers = #tpu.dot_dimension_numbers<[2], [1], [1], [2], [0, 0, 0, 1, 1, 2], [0], [0]>} : vector<1x32x32xf32>, vector<1x32x128xf32>, vector<1x32x128xf32> -> vector<1x32x128xf32>
    "tpu.trace_stop"() : () -> ()
    %33 = vector.shape_cast %32 : vector<1x32x128xf32> to vector<32x128xf32>
    %34 = vector.broadcast %29 : vector<1x128xf32> to vector<32x128xf32>
    %35 = arith.addf %33, %34 : vector<32x128xf32>
    %36 = vector.broadcast %25 : vector<32x1xf32> to vector<32x128xf32>
    %37 = arith.mulf %35, %36 : vector<32x128xf32>
    %c0_18 = arith.constant 0 : index
    %c0_19 = arith.constant 0 : index
    %38 = vector.load %arg7[%c0_18, %c0_19] : memref<128x128xf32, #tpu.memory_space<vmem>>, vector<128x128xf32>
    %c0_20 = arith.constant 0 : index
    %c0_21 = arith.constant 0 : index
    %39 = vector.load %arg8[%c0_20, %c0_21] : memref<1x128xf32, #tpu.memory_space<vmem>>, vector<1x128xf32>
    %cst_22 = arith.constant dense<0.000000e+00> : vector<32x128xf32>
    %40 = tpu.matmul %37, %38, %cst_22 {dimension_numbers = #tpu.dot_dimension_numbers<[1], [0], [0], [1], [0, 0, 1, 1], [], []>} : vector<32x128xf32>, vector<128x128xf32>, vector<32x128xf32> -> vector<32x128xf32>
    %41 = vector.shape_cast %40 : vector<32x128xf32> to vector<1x32x128xf32>
    "tpu.trace_start"() <{level = 10 : i32, message = "gpq,gqd->gpd"}> : () -> ()
    %cst_23 = arith.constant dense<0.000000e+00> : vector<1x32x128xf32>
    %42 = tpu.matmul %23, %41, %cst_23 {dimension_numbers = #tpu.dot_dimension_numbers<[2], [1], [1], [2], [0, 0, 0, 1, 1, 2], [0], [0]>} : vector<1x32x32xf32>, vector<1x32x128xf32>, vector<1x32x128xf32> -> vector<1x32x128xf32>
    "tpu.trace_stop"() : () -> ()
    %43 = vector.shape_cast %42 : vector<1x32x128xf32> to vector<32x128xf32>
    %44 = vector.broadcast %39 : vector<1x128xf32> to vector<32x128xf32>
    %45 = arith.addf %43, %44 : vector<32x128xf32>
    %46 = vector.broadcast %25 : vector<32x1xf32> to vector<32x128xf32>
    %47 = arith.mulf %45, %46 : vector<32x128xf32>
    %48 = vector.shape_cast %47 : vector<32x128xf32> to vector<2x16x128xf32>
    %c0_24 = arith.constant 0 : index
    %c0_25 = arith.constant 0 : index
    %c0_26 = arith.constant 0 : index
    %49 = vector.load %arg9[%c0_24, %c0_25, %c0_26] : memref<2x16x128xf32, #tpu.memory_space<vmem>>, vector<2x16x128xf32>
    tpu.vector_store %arg9[%c0_24, %c0_25, %c0_26], %48 {strides = array<i32>} : memref<2x16x128xf32, #tpu.memory_space<vmem>>, vector<2x16x128xf32>,
    return
  }
  func.func @transform_0(%arg0: i32) -> (i32, i32, i32) {
    %c0_i32 = arith.constant 0 : i32
    %c0_i32_0 = arith.constant 0 : i32
    %c0_i32_1 = arith.constant 0 : i32
    return %arg0, %c0_i32, %c0_i32_0 : i32, i32, i32
  }
  func.func @transform_1(%arg0: i32) -> (i32, i32, i32) {
    %c0_i32 = arith.constant 0 : i32
    %c0_i32_0 = arith.constant 0 : i32
    %c0_i32_1 = arith.constant 0 : i32
    return %arg0, %c0_i32, %c0_i32_0 : i32, i32, i32
  }
  func.func @transform_2(%arg0: i32) -> (i32, i32, i32) {
    %c0_i32 = arith.constant 0 : i32
    %c0_i32_0 = arith.constant 0 : i32
    %c0_i32_1 = arith.constant 0 : i32
    return %arg0, %c0_i32, %c0_i32_0 : i32, i32, i32
  }
  func.func @transform_3(%arg0: i32) -> (i32, i32) {
    %c0_i32 = arith.constant 0 : i32
    %c0_i32_0 = arith.constant 0 : i32
    %c0_i32_1 = arith.constant 0 : i32
    return %c0_i32, %c0_i32_0 : i32, i32
  }
  func.func @transform_4(%arg0: i32) -> (i32, i32) {
    %c0_i32 = arith.constant 0 : i32
    %c0_i32_0 = arith.constant 0 : i32
    %c0_i32_1 = arith.constant 0 : i32
    return %c0_i32, %c0_i32_0 : i32, i32
  }
  func.func @transform_5(%arg0: i32) -> (i32, i32) {
    %c0_i32 = arith.constant 0 : i32
    %c0_i32_0 = arith.constant 0 : i32
    %c0_i32_1 = arith.constant 0 : i32
    return %c0_i32, %c0_i32_0 : i32, i32
  }
  func.func @transform_6(%arg0: i32) -> (i32, i32) {
    %c0_i32 = arith.constant 0 : i32
    %c0_i32_0 = arith.constant 0 : i32
    %c0_i32_1 = arith.constant 0 : i32
    return %c0_i32, %c0_i32_0 : i32, i32
  }
  func.func @transform_7(%arg0: i32) -> (i32, i32) {
    %c0_i32 = arith.constant 0 : i32
    %c0_i32_0 = arith.constant 0 : i32
    %c0_i32_1 = arith.constant 0 : i32
    return %c0_i32, %c0_i32_0 : i32, i32
  }
  func.func @transform_8(%arg0: i32) -> (i32, i32, i32) {
    %c0_i32 = arith.constant 0 : i32
    %c0_i32_0 = arith.constant 0 : i32
    %c0_i32_1 = arith.constant 0 : i32
    return %arg0, %c0_i32, %c0_i32_0 : i32, i32, i32
  }
}

</mosaic_0001>

<bundles_post_ra>
// kernel: tpu_custom_call.1
= control target key start
LH: loop header
LB: loop body
LE: loop exit
PB: predicated region body
PF: predicated region fallthrough
CT: control target
= control target key end

     0   :  { %13 = vsyncpa [#allocation3], 0  ;;  %s833_s0 = inlined_call_operand.vmem [shape: f32[2,16,16], index: 0, kind: input, shape index: {}]   ;;  %s834_s1 = inlined_call_operand.hbm [shape: f32[2,16,32], index: 1, kind: input, shape index: {}]   ;;  %s835_s2 = inlined_call_operand.vmem [shape: f32[2,16,1], index: 2, kind: input, shape index: {}]   ;;  %s836_s3 = inlined_call_operand.hbm [shape: f32[32,32], index: 3, kind: input, shape index: {}]   ;;  %s837_s4 = inlined_call_operand.hbm [shape: f32[32,128], index: 4, kind: input, shape index: {}]   ;;  %s838_s5 = inlined_call_operand.vmem [shape: f32[1,128], index: 5, kind: input, shape index: {}]   ;;  %s839_s6 = inlined_call_operand.hbm [shape: f32[128,128], index: 6, kind: input, shape index: {}]   ;;  %s840_s7 = inlined_call_operand.vmem [shape: f32[1,128], index: 7, kind: input, shape index: {}]   ;;  %s841_s8 = inlined_call_operand.hbm [shape: f32[2,16,128], index: 8, kind: output, shape index: {}]  }
   0x1   :  { %14 = vsyncpa [#allocation6], 0 }
   0x2   :  { %15 = vsyncpa [#allocation9], 0 }
   0x3   :  { %16 = vsyncpa [#allocation4], 0  ;;  %s38_s29 = sshll.u32 %s836_s3, 4  ;;  %s660_s30 = smov [#allocation5]   ;;  %s39_s29 = int_to_ptr.hbm [resolvable:$true] %s38_s29 }
   0x4   :  { %s40_s9 = sshll.u32 %s660_s30, 4  ;;  %s23_s12 = sshll.u32 %s834_s1, 4  ;;  %s41_s9 = int_to_ptr.vmem [resolvable:$true] %s40_s9  ;;  %s24_s12 = int_to_ptr.hbm [resolvable:$true] %s23_s12 }
   0x5   :  { %s661_s13 = smov 128   ;;  %s662_s14 = smov 8  }
   0x6   :  { %46 = dma.hbm_to_vmem [thread:$0]  %s39_s29, 512, %s41_s9, [#allocation6], %s661_s13, %s661_s13, %s662_s14  }
   0x7   :  { %s663_s15 = smov [#allocation2]   ;;  %s51_s3 = sshll.u32 %s837_s4, 4  ;;  %s52_s3 = int_to_ptr.hbm [resolvable:$true] %s51_s3 }
   0x8   :  { %s25_s16 = sshll.u32 %s663_s15, 4  ;;  %s66_s20 = sshll.u32 %s839_s6, 4  ;;  %s26_s16 = int_to_ptr.vmem [resolvable:$true] %s25_s16  ;;  %s67_s20 = int_to_ptr.hbm [resolvable:$true] %s66_s20 }
   0x9   :  { %31 = dma.hbm_to_vmem [thread:$0]  %s24_s12, 512, %s26_s16, [#allocation3], %s661_s13, %s661_s13, %s662_s14  }
   0xa   :  { %s664_s21 = smov [#allocation7]   ;;  %s665_s23 = smov [#allocation8]  }
   0xb   :  { %s53_s22 = sshll.u32 %s664_s21, 4  ;;  %s68_s4 = sshll.u32 %s665_s23, 4  ;;  %s54_s22 = int_to_ptr.vmem [resolvable:$true] %s53_s22  ;;  %s69_s4 = int_to_ptr.vmem [resolvable:$true] %s68_s4 }
   0xc   :  { %59 = dma.hbm_to_vmem [thread:$0]  %s52_s3, 512, %s54_s22, [#allocation6], %s661_s13, %s661_s13, %s662_s14  }
   0xd   :  { %74 = dma.hbm_to_vmem [thread:$0]  %s67_s20, 2048, %s69_s4, [#allocation9], %s661_s13, %s661_s13, %s662_s14  }
   0xe   :  { %652 = dma.done.wait [#allocation3], 512  }
   0xf   :  { %653 = vsyncadd [#allocation3], 4294966784 }
  0x10   :  { %654 = dma.done.wait [#allocation6], 1024  }
  0x11   :  { %655 = vsyncadd [#allocation6], 4294966272 }
  0x12   :  { %656 = dma.done.wait [#allocation9], 2048  }
  0x13   :  { %657 = vsyncadd [#allocation9], 4294965248  ;;  %v97_v0 = vlaneseq  ;;  %vm112_vm1 = vcmask 130048   ;;  %v95_v4 = vld [vmem:[%s833_s0 + $0x10] sm:$0xff]  ;;  %v93_v5 = vld [vmem:[%s833_s0] sm:$0xff]  ;;  %vm250_vm3 = vcmask 261120  }
  0x14   :  { %v248_v8 = vld [vmem:[#allocation7 + $0x18] sm:$0xff]  ;;  %v247_v9 = vld [vmem:[#allocation7 + $0x10] sm:$0xff]  ;;  %v94_v13 = vld [vmem:[%s833_s0 + $0x8] sm:$0xff]  ;;  %s668_s19 = smov [#allocation10]   ;;  %s452_s23 = sshll.u32 %s841_s8, 4  ;;  %s453_s23 = int_to_ptr.hbm [resolvable:$true] %s452_s23 }
  0x15   :  { %v98_v1 = vshrl.u32 %v97_v0, 7  ;;  %v738_v2 = vand.u32 127, %v97_v0  ;;  %v96_v12 = vld [vmem:[%s833_s0 + $0x18] sm:$0xff]  ;;  %275 = vmatpush.msra.mxu0 %v248_v8  ;;  %v246_v14 = vld [vmem:[#allocation7 + $0x8] sm:$0xff]  ;;  %v245_v17 = vld [vmem:[#allocation7] sm:$0xff]  ;;  %s666_s0 = smov 16  }
  0x16   :  { %v241_v18 = vld [vmem:[#allocation2] sm:$0xff]  ;;  %v242_v21 = vld [vmem:[#allocation2 + $0x8] sm:$0xff]  ;;  %v243_v22 = vld [vmem:[#allocation2 + $0x10] sm:$0xff]  ;;  %s450_s20 = sshll.u32 %s668_s19, 4  ;;  %s451_s20 = int_to_ptr.vmem [resolvable:$true] %s450_s20 }
  0x17   :  { %vm102_vm0 = vcmp.eq.s32.totalorder %v98_v1, %v738_v2  ;;  %v99_v3 = vadd.s32 8, %v98_v1  ;;  %276 = vmatpush.msra.mxu0 %v247_v9  ;;  %v244_v23 = vld [vmem:[#allocation2 + $0x18] sm:$0xff]  ;;  %v178_v56 = vadd.s32 4294967288, %v738_v2 }
  0x18   :  { %v747_v6 = vsel %vm102_vm0, 1.0, %v95_v4  ;;  %v749_v7 = vsel %vm102_vm0, 1.0, %v93_v5  ;;  %vm180_vm0 = vcmask 130112  }
  0x19   :  { %v119_v10 = vsel %vm112_vm1, %v747_v6, 0.0  ;;  %v113_v11 = vsel %vm112_vm1, %v749_v7, 0.0  ;;  %vm103_vm2 = vcmp.eq.s32.totalorder %v99_v3, %v738_v2  ;;  %277 = vmatpush.msra.mxu0 %v246_v14 }
  0x1a   :  { %120 = vadd.xlane.f32.xlu1 %v119_v10  ;;  %114 = vadd.xlane.f32.xlu0 %v113_v11  ;;  %v762_v15 = vsel %vm103_vm2, 1.0, %v96_v12  ;;  %v764_v16 = vsel %vm103_vm2, 1.0, %v94_v13 }
  0x1b   :  { %v122_v19 = vsel %vm112_vm1, %v762_v15, 0.0  ;;  %v116_v20 = vsel %vm112_vm1, %v764_v16, 0.0  ;;  %278 = vmatpush.msra.mxu0 %v245_v17  ;;  %v667_v17 = vmov 0  }
  0x1c   :  { %467 = vmatmul.msk.f32.vlgmr.msra.gmra.mxu0 %vm250_vm3, %v241_v18  ;;  %521 = vset.pattern.permute.xlu0 %v667_v17  ;;  %v239_v18 = vld [vmem:[%s835_s2 + $0x10] sm:$0xff] }
  0x1d   :  { %520 = vset.pattern.permute.xlu2 %v667_v17 }
  0x22   :  { %123 = vadd.xlane.f32.xlu1 %v122_v19  ;;  %117 = vadd.xlane.f32.xlu0 %v116_v20 }
  0x24   :  { %468 = vmatmul.msk.f32.gmra.mxu0 %vm250_vm3, %v242_v21 }
  0x2c   :  { %469 = vmatmul.msk.f32.gmra.mxu0 %vm250_vm3, %v243_v22  ;;  %v240_v22 = vld [vmem:[%s835_s2 + $0x18] sm:$0xff] }
  0x34   :  { %470 = vmatmul.msk.f32.gmra.mxu0 %vm250_vm3, %v244_v23  ;;  %v375_v23 = vld [vmem:[#allocation8 + $0x78] sm:$0xff] }
  0x35   :  { %377 = vmatpush.msrb.mxu0 %v375_v23  ;;  %480 = vmatpush.msra.mxu2 %v375_v23 }
  0x8d   :  { %v121_v24 = vpop.xlane.xlu1 %120  ;;  %v115_v25 = vpop.xlane.xlu0 %114 }
  0x8e   :  { %v127_v26 = vmax.f32 %v121_v24, 1.0  ;;  %v125_v27 = vmax.f32 %v115_v25, 1.0  ;;  %v374_v24 = vld [vmem:[#allocation8 + $0x70] sm:$0xff]  ;;  %v373_v25 = vld [vmem:[#allocation8 + $0x68] sm:$0xff] }
  0x8f   :  { %378 = vmatpush.msrb.mxu0 %v374_v24  ;;  %482 = vmatpush.msra.mxu2 %v374_v24 }
  0x90   :  { %524 = vrsqrt.f32 %v127_v26  ;;  %vm135_vm5 = vweird.f32 %v125_v27  ;;  %vm155_vm7 = vweird.f32 %v127_v26 }
  0x91   :  { %526 = vrsqrt.f32 %v125_v27  ;;  %379 = vmatpush.msrb.mxu0 %v373_v25  ;;  %484 = vmatpush.msra.mxu2 %v373_v25 }
  0x95   :  { %v124_v28 = vpop.xlane.xlu1 %123  ;;  %v118_v29 = vpop.xlane.xlu0 %117 }
  0x96   :  { %v525_v30 = vpop.eup %524  ;;  %v128_v31 = vmax.f32 %v124_v28, 1.0  ;;  %v126_v32 = vmax.f32 %v118_v29, 1.0  ;;  %v372_v28 = vld [vmem:[#allocation8 + $0x60] sm:$0xff] }
  0x97   :  { %v527_v33 = vpop.eup %526  ;;  %v150_v34 = vmul.f32 %v525_v30, %v127_v26  ;;  %vm156_vm4 = vweird.f32 %v525_v30  ;;  %v230_v26 = vld [vmem:[#allocation5 + $0x8] sm:$0xff]  ;;  %380 = vmatpush.msrb.mxu0 %v372_v28  ;;  %486 = vmatpush.msra.mxu2 %v372_v28 }
  0x98   :  { %v130_v35 = vmul.f32 %v527_v33, %v125_v27  ;;  %528 = vrsqrt.f32 %v128_v31  ;;  %vm136_vm6 = vweird.f32 %v527_v33  ;;  %vm157_vm9 = vmor %vm155_vm7, %vm156_vm4  ;;  %vm145_vm10 = vweird.f32 %v126_v32 }
  0x99   :  { %v151_v36 = vmul.f32 %v525_v30, %v150_v34  ;;  %530 = vrsqrt.f32 %v126_v32  ;;  %v280_v40 = vpop.f32.mrf.mxu0  ;;  %vm137_vm12 = vmor %vm135_vm5, %vm136_vm6  ;;  %vm165_vm13 = vweird.f32 %v128_v31  ;;  %v369_v34 = vld [vmem:[#allocation8 + $0x48] sm:$0xff] }
  0x9a   :  { %v131_v37 = vmul.f32 %v527_v33, %v130_v35  ;;  %v368_v35 = vld [vmem:[#allocation8 + $0x40] sm:$0xff] }
  0x9b   :  { %v152_v38 = vmul.f32 0.5, %v151_v36  ;;  %v367_v36 = vld [vmem:[#allocation8 + $0x38] sm:$0xff] }
  0x9c   :  { %v132_v39 = vmul.f32 0.5, %v131_v37  ;;  %v366_v37 = vld [vmem:[#allocation8 + $0x30] sm:$0xff] }
  0x9d   :  { %v153_v43 = vsub.f32 1.5, %v152_v38  ;;  %v231_v38 = vld [vmem:[#allocation5 + $0x10] sm:$0xff] }
  0x9e   :  { %v529_v41 = vpop.eup %528  ;;  %v133_v45 = vsub.f32 1.5, %v132_v39  ;;  %v365_v39 = vld [vmem:[#allocation8 + $0x28] sm:$0xff] }
  0x9f   :  { %v531_v42 = vpop.eup %530  ;;  %v160_v44 = vmul.f32 %v529_v41, %v128_v31  ;;  %v154_v49 = vmul.f32 %v525_v30, %v153_v43  ;;  %vm166_vm8 = vweird.f32 %v529_v41 }
  0xa0   :  { %v140_v46 = vmul.f32 %v531_v42, %v126_v32  ;;  %v134_v52 = vmul.f32 %v527_v33, %v133_v45  ;;  %vm146_vm11 = vweird.f32 %v531_v42  ;;  %vm167_vm14 = vmor %vm165_vm13, %vm166_vm8  ;;  %v371_v32 = vld [vmem:[#allocation8 + $0x58] sm:$0xff] }
  0xa1   :  { %v161_v47 = vmul.f32 %v529_v41, %v160_v44  ;;  %v283_v54 = vpop.f32.mrf.mxu0  ;;  %v158_v57 = vsel %vm157_vm9, %v525_v30, %v154_v49  ;;  %vm147_vm15 = vmor %vm145_vm10, %vm146_vm11  ;;  %v238_v30 = vld [vmem:[%s835_s2 + $0x8] sm:$0xff]  ;;  %381 = vmatpush.msrb.mxu0 %v371_v32  ;;  %488 = vmatpush.msra.mxu2 %v371_v32  ;;  %v232_v44 = vld [vmem:[#allocation5 + $0x18] sm:$0xff] }
  0xa2   :  { %v141_v48 = vmul.f32 %v531_v42, %v140_v46  ;;  %v138_v60 = vsel %vm137_vm12, %v527_v33, %v134_v52  ;;  %v182_v62 = vperm.slane %v158_v57, %v738_v2  ;;  %v171_v3 = vmul.f32 %v158_v57, %v747_v6  ;;  %v370_v33 = vld [vmem:[#allocation8 + $0x50] sm:$0xff] }
  0xa3   :  { %v162_v50 = vmul.f32 0.5, %v161_v47  ;;  %v177_v4 = vperm.slane %v138_v60, %v738_v2  ;;  %v169_v9 = vmul.f32 %v138_v60, %v749_v7  ;;  %v237_v7 = vld [vmem:[%s835_s2] sm:$0xff]  ;;  %382 = vmatpush.msrb.mxu0 %v370_v33  ;;  %490 = vmatpush.msra.mxu2 %v370_v33  ;;  %v362_v49 = vld [vmem:[#allocation8 + $0x10] sm:$0xff] }
  0xa4   :  { %v142_v51 = vmul.f32 0.5, %v141_v48  ;;  %v364_v47 = vld [vmem:[#allocation8 + $0x20] sm:$0xff]  ;;  %v363_v48 = vld [vmem:[#allocation8 + $0x18] sm:$0xff] }
  0xa5   :  { %v163_v53 = vsub.f32 1.5, %v162_v50  ;;  %383 = vmatpush.msrb.mxu0 %v369_v34  ;;  %492 = vmatpush.msra.mxu2 %v369_v34  ;;  %v361_v50 = vld [vmem:[#allocation8 + $0x8] sm:$0xff] }
  0xa6   :  { %v143_v55 = vsub.f32 1.5, %v142_v51  ;;  %v360_v51 = vld [vmem:[#allocation8] sm:$0xff] }
  0xa7   :  { %v164_v58 = vmul.f32 %v529_v41, %v163_v53  ;;  %384 = vmatpush.msrb.mxu0 %v368_v35  ;;  %494 = vmatpush.msra.mxu2 %v368_v35  ;;  %v522_v53 = vld [vmem:[%s838_s5] ss:$0 sm:$0xff] }
  0xa8   :  { %v144_v59 = vmul.f32 %v531_v42, %v143_v55 }
  0xa9   :  { %v168_v61 = vsel %vm167_vm14, %v529_v41, %v164_v58  ;;  %v286_v13 = vpop.f32.mrf.mxu0  ;;  %385 = vmatpush.msrb.mxu0 %v367_v36  ;;  %496 = vmatpush.msra.mxu2 %v367_v36 }
  0xaa   :  { %v172_v63 = vmul.f32 %v168_v61, %v762_v15  ;;  %v183_v0 = vperm.slane %v168_v61, %v178_v56  ;;  %v148_v1 = vsel %vm147_vm15, %v531_v42, %v144_v59 }
  0xab   :  { %v179_v5 = vperm.slane %v148_v1, %v178_v56  ;;  %v170_v6 = vmul.f32 %v148_v1, %v764_v16  ;;  %v229_v16 = vld [vmem:[#allocation5] sm:$0xff]  ;;  %386 = vmatpush.msrb.mxu0 %v366_v37  ;;  %498 = vmatpush.msra.mxu2 %v366_v37 }
  0xac   :  { %v184_v8 = vsel %vm180_vm0, %v183_v0, %v182_v62 }
  0xad   :  { %v780_v10 = vmul.f32 %v184_v8, %v172_v63  ;;  %v782_v11 = vmul.f32 %v184_v8, %v171_v3  ;;  %v181_v12 = vsel %vm180_vm0, %v179_v5, %v177_v4  ;;  %387 = vmatpush.msrb.mxu0 %v365_v39  ;;  %500 = vmatpush.msra.mxu2 %v365_v39 }
  0xae   :  { %v205_v14 = vmul.f32 %v181_v12, %v169_v9  ;;  %v206_v15 = vmul.f32 %v181_v12, %v170_v6  ;;  %v523_v12 = vld [vmem:[%s840_s7] ss:$0 sm:$0xff] }
  0xaf   :  { %219 = vrot.lane.b32.xlu1 %v780_v10, %s666_s0  ;;  %217 = vrot.lane.b32.xlu0 %v782_v11, %s666_s0 }
  0xb0   :  { %213 = vrot.lane.b32.xlu2 %v205_v14, %s666_s0  ;;  %388 = vmatpush.msrb.mxu0 %v364_v47 }
  0xb1   :  { %v289_v2 = vpop.f32.mrf.mxu0  ;;  %502 = vmatpush.msra.mxu2 %v364_v47 }
  0xb2   :  { %319 = vmatpush.msra.mxu1 %v289_v2  ;;  %389 = vmatpush.msrb.mxu0 %v363_v48 }
  0xb3   :  { %504 = vmatpush.msra.mxu2 %v363_v48 }
  0xb4   :  { %320 = vmatpush.msra.mxu1 %v286_v13  ;;  %390 = vmatpush.msrb.mxu0 %v362_v49 }
  0xb5   :  { %506 = vmatpush.msra.mxu2 %v362_v49 }
  0xb6   :  { %321 = vmatpush.msra.mxu1 %v283_v54  ;;  %391 = vmatpush.msrb.mxu0 %v361_v50 }
  0xb7   :  { %338 = vperm.xlu0 %521, %v237_v7   ;;  %508 = vmatpush.msra.mxu2 %v361_v50 }
  0xb8   :  { %215 = vrot.lane.b32.xlu2 %v206_v15, %s666_s0  ;;  %322 = vmatpush.msra.mxu1 %v280_v40 }
  0xb9   :  { %392 = vmatpush.msrb.mxu0 %v360_v51  ;;  %510 = vmatpush.msra.mxu2 %v360_v51 }
  0xba   :  { %479 = vmatpush.msrb.mxu1 %v375_v23 }
  0xbc   :  { %481 = vmatpush.msrb.mxu1 %v374_v24 }
  0xbe   :  { %483 = vmatpush.msrb.mxu1 %v373_v25 }
  0xc0   :  { %348 = vperm.xlu2 %520, %v239_v18   ;;  %485 = vmatpush.msrb.mxu1 %v372_v28 }
  0xc2   :  { %487 = vmatpush.msrb.mxu1 %v371_v32 }
  0xc4   :  { %489 = vmatpush.msrb.mxu1 %v370_v33 }
  0xc6   :  { %491 = vmatpush.msrb.mxu1 %v369_v34 }
  0xc8   :  { %353 = vperm.xlu2 %520, %v240_v22   ;;  %493 = vmatpush.msrb.mxu1 %v368_v35 }
  0xca   :  { %495 = vmatpush.msrb.mxu1 %v367_v36 }
  0xcc   :  { %497 = vmatpush.msrb.mxu1 %v366_v37 }
  0xce   :  { %499 = vmatpush.msrb.mxu1 %v365_v39 }
  0xd0   :  { %343 = vperm.xlu2 %520, %v238_v30   ;;  %501 = vmatpush.msrb.mxu1 %v364_v47 }
  0xd2   :  { %503 = vmatpush.msrb.mxu1 %v363_v48 }
  0xd4   :  { %505 = vmatpush.msrb.mxu1 %v362_v49 }
  0xd6   :  { %507 = vmatpush.msrb.mxu1 %v361_v50 }
  0xd8   :  { %509 = vmatpush.msrb.mxu1 %v360_v51 }
 0x10a   :  { %v214_v19 = vpop.permute.xlu2 %213 }
 0x10b   :  { %v225_v20 = vsel %vm112_vm1, %v205_v14, %v214_v19 }
 0x10c   :  { %v794_v21 = vmul.f32 %v229_v16, %v225_v20 }
 0x10e   :  { %471 = vmatmul.msk.f32.vlgmr.msra.gmra.mxu1 %vm250_vm3, %v794_v21 }
 0x112   :  { %v216_v27 = vpop.permute.xlu2 %215 }
 0x113   :  { %v226_v29 = vsel %vm112_vm1, %v206_v15, %v216_v27 }
 0x114   :  { %v805_v31 = vmul.f32 %v230_v26, %v226_v29 }
 0x116   :  { %472 = vmatmul.msk.f32.gmra.mxu1 %vm250_vm3, %v805_v31 }
 0x11a   :  { %v349_v52 = vpop.permute.xlu2 %348 }
 0x121   :  { %v218_v40 = vpop.permute.xlu0 %217  ;;  %v220_v43 = vpop.permute.xlu1 %219 }
 0x122   :  { %v227_v41 = vsel %vm112_vm1, %v782_v11, %v218_v40  ;;  %v228_v45 = vsel %vm112_vm1, %v780_v10, %v220_v43  ;;  %v354_v54 = vpop.permute.xlu2 %353 }
 0x123   :  { %v235_v42 = vmul.f32 %v231_v38, %v227_v41  ;;  %v236_v46 = vmul.f32 %v232_v44, %v228_v45 }
 0x125   :  { %473 = vmatmul.msk.f32.gmra.mxu1 %vm250_vm3, %v235_v42 }
 0x129   :  { %v339_v56 = vpop.permute.xlu0 %338 }
 0x12a   :  { %v344_v60 = vpop.permute.xlu2 %343 }
 0x12d   :  { %474 = vmatmul.msk.f32.gmra.mxu1 %vm250_vm3, %v236_v46 }
 0x18b   :  { %v324_v55 = vpop.f32.mrf.mxu1 }
 0x18c   :  { %v325_v57 = vadd.f32 %v522_v53, %v324_v55 }
 0x18e   :  { %v356_v58 = vmul.f32 %v339_v56, %v325_v57 }
 0x190   :  { %393 = vmatmul.f32.vlgmr.msrb.gmra.mxu0 %v356_v58 }
 0x193   :  { %v327_v59 = vpop.f32.mrf.mxu1 }
 0x194   :  { %v328_v61 = vadd.f32 %v522_v53, %v327_v59 }
 0x196   :  { %v357_v62 = vmul.f32 %v344_v60, %v328_v61 }
 0x198   :  { %396 = vmatmul.f32.vlgmr.msrb.gmra.mxu1 %v357_v62 }
 0x1a2   :  { %v330_v63 = vpop.f32.mrf.mxu1 }
 0x1a3   :  { %v331_v0 = vadd.f32 %v522_v53, %v330_v63 }
 0x1a5   :  { %v358_v1 = vmul.f32 %v349_v52, %v331_v0 }
 0x1a7   :  { %399 = vmatmul.f32.vlgmr.msra.gmra.mxu2 %v358_v1 }
 0x1aa   :  { %v333_v3 = vpop.f32.mrf.mxu1 }
 0x1ab   :  { %v334_v4 = vadd.f32 %v522_v53, %v333_v3 }
 0x1ad   :  { %v359_v5 = vmul.f32 %v354_v54, %v334_v4 }
 0x1af   :  { %402 = vmatmul.f32.gmra.mxu2 %v359_v5 }
 0x20d   :  { %v394_v11 = vpop.f32.mrf.mxu0 }
 0x215   :  { %v397_v10 = vpop.f32.mrf.mxu1 }
 0x22a   :  { %v400_v8 = vpop.f32.mrf.mxu2 }
 0x232   :  { %v403_v9 = vpop.f32.mrf.mxu2 }
 0x233   :  { %421 = vmatpush.msra.mxu3 %v403_v9 }
 0x235   :  { %422 = vmatpush.msra.mxu3 %v400_v8 }
 0x237   :  { %423 = vmatpush.msra.mxu3 %v397_v10 }
 0x239   :  { %424 = vmatpush.msra.mxu3 %v394_v11 }
 0x23a   :  { %475 = vmatmul.msk.f32.vlgmr.msra.gmra.mxu3 %vm250_vm3, %v794_v21 }
 0x242   :  { %476 = vmatmul.msk.f32.gmra.mxu3 %vm250_vm3, %v805_v31 }
 0x24a   :  { %477 = vmatmul.msk.f32.gmra.mxu3 %vm250_vm3, %v235_v42 }
 0x252   :  { %478 = vmatmul.msk.f32.gmra.mxu3 %vm250_vm3, %v236_v46 }
 0x2bd   :  { %v426_v13 = vpop.f32.mrf.mxu3 }
 0x2be   :  { %v427_v14 = vadd.f32 %v523_v12, %v426_v13 }
 0x2c0   :  { %v438_v6 = vmul.f32 %v427_v14, %v339_v56 }
 0x2c2   :  { %442 = vst [vmem:[#allocation10] sm:$0xff] %v438_v6 }
 0x2c5   :  { %v429_v2 = vpop.f32.mrf.mxu3 }
 0x2c6   :  { %v430_v15 = vadd.f32 %v523_v12, %v429_v2 }
 0x2c8   :  { %v439_v7 = vmul.f32 %v430_v15, %v344_v60 }
 0x2ca   :  { %443 = vst [vmem:[#allocation10 + $0x8] sm:$0xff] %v439_v7 }
 0x2cd   :  { %v432_v17 = vpop.f32.mrf.mxu3 }
 0x2ce   :  { %v433_v18 = vadd.f32 %v523_v12, %v432_v17 }
 0x2d0   :  { %v440_v16 = vmul.f32 %v433_v18, %v349_v52 }
 0x2d2   :  { %444 = vst [vmem:[#allocation10 + $0x10] sm:$0xff] %v440_v16 }
 0x2d5   :  { %v435_v19 = vpop.f32.mrf.mxu3 }
 0x2d6   :  { %v436_v20 = vadd.f32 %v523_v12, %v435_v19 }
 0x2d8   :  { %v441_v21 = vmul.f32 %v436_v20, %v354_v54 }
 0x2da   :  { %445 = vst [vmem:[#allocation10 + $0x18] sm:$0xff] %v441_v21 }
 0x2db   :  { %458 = dma.vmem_to_hbm [thread:$0]  %s451_s20, 512, %s453_s23, [#allocation4], %s661_s13, %s661_s13, %s662_s14  }
 0x2dc   :  { %658 = dma.done.wait [#allocation4], 512  }
 0x2dd   :  { %659 = vsyncadd [#allocation4], 4294966784 }
 0x2de   :  { %463 = vsyncpa [#allocation3], 1 }
 0x2df   :  { %464 = vsyncpa [#allocation6], 1 }
 0x2e0   :  { %465 = vsyncpa [#allocation9], 1 }
 0x2e1   :  { %466 = vsyncpa [#allocation4], 1 }

</bundles_post_ra>
